<compile_context>
chip_gen: v7x
topology: tpu7x:2x2x1
jax: 0.10.0
libtpu: 0.0.40
codegen_flags: <defaults>
</compile_context>

<pallas_src>
import jax
import jax.numpy as jnp
from jax import lax
from jax.experimental import pallas as pl
from jax.experimental.pallas import tpu as pltpu


def _make_kernel(n_rows, n_classes, block_rows, smooth_l1):
    """Kernel: one grid step = one block of `block_rows` examples."""

    def elem_l1(d):
        ad = jnp.abs(d)
        if smooth_l1:
            # F.smooth_l1_loss with beta = 1.0
            return jnp.where(ad < 1.0, 0.5 * d * d, ad - 0.5)
        return ad

    def kernel(cls_ref, reg_ref, tgt_ref, out_ref):
        i = pl.program_id(0)

        # Row-validity mask for the (possibly partial) last block.
        local_row = lax.broadcasted_iota(jnp.int32, (block_rows, 1), 0)
        valid = (i * block_rows + local_row) < n_rows            # (TM, 1) bool

        # Upcast AFTER the DMA so bf16 inputs travel as bf16 over HBM.
        logits = cls_ref[...].astype(jnp.float32)                # (TM, C)
        # Neutralize out-of-bounds rows before exp (garbage -> 0, stays finite).
        logits = jnp.where(valid, logits, 0.0)

        # Softmax expectation over classes (lane axis).
        m = jnp.max(logits, axis=-1, keepdims=True)              # (TM, 1)
        e = jnp.exp(logits - m)                                  # (TM, C)
        denom = jnp.sum(e, axis=-1, keepdims=True)               # (TM, 1)
        # Class-index weights as a tiny (1, C) lane row (no block-sized iota).
        k_row = lax.broadcasted_iota(
            jnp.int32, (1, n_classes), 1).astype(jnp.float32)
        num = jnp.sum(e * k_row, axis=-1, keepdims=True)         # (TM, 1)
        expect = num / denom                                     # (TM, 1)

        p_reg = reg_ref[...].astype(jnp.float32)                 # (TM, 1)
        t = tgt_ref[...].astype(jnp.float32)                     # (TM, 1)

        # jnp.where (not multiply) so NaN/Inf garbage rows are dropped cleanly.
        reg_contrib = jnp.where(valid, elem_l1(p_reg - t), 0.0)  # (TM, 1)
        cls_contrib = jnp.where(valid, elem_l1(expect - t), 0.0)  # (TM, 1)

        sum_reg = jnp.sum(reg_contrib, keepdims=True)            # (1, 1)
        sum_cls = jnp.sum(cls_contrib, keepdims=True)            # (1, 1)

        # Write this block's two partial sums into a lane-dense (8, 128) tile:
        # lane 0 = sum |p_reg - t|, lane 1 = sum |E[cls] - t| (replicated rows).
        lane = lax.broadcasted_iota(jnp.int32, (8, 128), 1)
        out_ref[...] = (jnp.where(lane == 0, sum_reg, 0.0)
                        + jnp.where(lane == 1, sum_cls, 0.0))

    return kernel


def double_l1_loss(logits0, logits1, y, *, reg_weight, cls_weight,
                   smooth_l1=False, block_rows=None):
    """Returns dict with l1_loss_reg, l1_loss_cls, loss (f32 scalars)."""
    n, c = logits1.shape
    p_reg = logits0.reshape(n, 1)   # metadata-only reshapes
    t = y.reshape(n, 1)

    def round_up(a, b):
        return (a + b - 1) // b * b

    if block_rows is None:
        # Target ~4 MiB per logits block (review guidance), in native dtype.
        target_bytes = 4 * 1024 * 1024
        block_rows = max(256, target_bytes // (c * logits1.dtype.itemsize))
    # Multiple of 16 so both f32 (8,) and bf16 (16,) sublane tiling are happy.
    tm = min(int(block_rows), round_up(n, 16))
    tm = round_up(tm, 16)
    num_blocks = -(-n // tm)

    kernel = _make_kernel(n, c, tm, smooth_l1)

    out = pl.pallas_call(
        kernel,
        out_shape=jax.ShapeDtypeStruct((num_blocks * 8, 128), jnp.float32),
        grid_spec=pltpu.PrefetchScalarGridSpec(
            num_scalar_prefetch=0,
            grid=(num_blocks,),
            in_specs=[
                pl.BlockSpec((tm, c), lambda i: (i, 0)),   # logits1, native layout/dtype
                pl.BlockSpec((tm, 1), lambda i: (i, 0)),   # p_reg
                pl.BlockSpec((tm, 1), lambda i: (i, 0)),   # target
            ],
            out_specs=pl.BlockSpec((8, 128), lambda i: (i, 0)),
        ),
        compiler_params=pltpu.CompilerParams(
            # Fully independent blocks -> splits across both TCs on v7x.
            dimension_semantics=("parallel",),
            # Big tiles + elementwise temporaries; also covers v5e's small
            # scoped-VMEM default (physical VMEM is far larger).
            vmem_limit_bytes=64 * 1024 * 1024,
        ),
    )(logits1, p_reg, t)

    # Tiny cross-block combine in the wrapper (num_blocks scalars each).
    partials = out.reshape(num_blocks, 8, 128)
    inv_n = jnp.float32(1.0 / n)
    l1_reg = jnp.sum(partials[:, 0, 0]) * inv_n
    l1_cls = jnp.sum(partials[:, 0, 1]) * inv_n
    rw = jnp.float32(reg_weight)
    cw = jnp.float32(cls_weight)
    loss = (rw * l1_reg + cw * l1_cls) / (rw + cw)
    return {"l1_loss_reg": l1_reg, "l1_loss_cls": l1_cls, "loss": loss}


def _reference(logits0, logits1, y, reg_weight, cls_weight, smooth_l1=False):
    """Pure-JAX reference mirroring the PyTorch forward."""
    p_reg = logits0.astype(jnp.float32)
    t = y.astype(jnp.float32)
    p = jax.nn.softmax(logits1.astype(jnp.float32), axis=1)
    p = p * jnp.arange(p.shape[1], dtype=jnp.float32)
    p_cls = jnp.sum(p, axis=1, keepdims=True)

    def l1(a, b):
        d = a - b
        if smooth_l1:
            ad = jnp.abs(d)
            return jnp.mean(jnp.where(ad < 1.0, 0.5 * d * d, ad - 0.5))
        return jnp.mean(jnp.abs(d))

    lr = l1(p_reg, t)
    lc = l1(p_cls, t)
    loss = (reg_weight * lr + cls_weight * lc) / (reg_weight + cls_weight)
    return {"l1_loss_reg": lr, "l1_loss_cls": lc, "loss": loss}


def _check(out, ref):
    for name in ("l1_loss_reg", "l1_loss_cls", "loss"):
        assert jnp.allclose(out[name], ref[name], rtol=1e-5, atol=1e-4), (
            name, out[name], ref[name])


if __name__ == "__main__":
    key = jax.random.PRNGKey(0)
    k1, k2, k3 = jax.random.split(key, 3)
    reg_w, cls_w = 1.0, 0.5

    # Case 1: small batch, 240 classes (per the module spec), single block.
    N, C = 16, 240
    logits0 = jax.random.normal(k1, (N, 1), dtype=jnp.float32) * 40.0 + 120.0
    logits1 = jax.random.normal(k2, (N, C), dtype=jnp.float32)
    y = jax.random.uniform(k3, (N, 1), minval=0.0, maxval=239.0,
                           dtype=jnp.float32)
    out = double_l1_loss(logits0, logits1, y,
                         reg_weight=reg_w, cls_weight=cls_w, smooth_l1=False)
    out = jax.tree_util.tree_map(jax.block_until_ready, out)
    _check(out, _reference(logits0, logits1, y, reg_w, cls_w, smooth_l1=False))

    # Case 2: multi-block grid with a partial last block (row masking).
    k4, k5, k6 = jax.random.split(k3, 3)
    N2 = 300
    logits0b = jax.random.normal(k4, (N2, 1), dtype=jnp.float32) * 40.0 + 120.0
    logits1b = jax.random.normal(k5, (N2, C), dtype=jnp.float32)
    yb = jax.random.uniform(k6, (N2, 1), minval=0.0, maxval=239.0,
                            dtype=jnp.float32)
    out2 = double_l1_loss(logits0b, logits1b, yb,
                          reg_weight=reg_w, cls_weight=cls_w,
                          smooth_l1=False, block_rows=128)
    out2 = jax.tree_util.tree_map(jax.block_until_ready, out2)
    _check(out2, _reference(logits0b, logits1b, yb, reg_w, cls_w,
                            smooth_l1=False))

    # Case 3: bf16 logits consumed in native dtype (no wrapper upcast),
    # smooth_l1 path, multi-block.
    k7, k8, k9 = jax.random.split(k6, 3)
    N3 = 200
    logits0c = (jax.random.normal(k7, (N3, 1), dtype=jnp.float32) * 40.0
                + 120.0).astype(jnp.bfloat16)
    logits1c = jax.random.normal(k8, (N3, C),
                                 dtype=jnp.float32).astype(jnp.bfloat16)
    yc = jax.random.uniform(k9, (N3, 1), minval=0.0, maxval=239.0,
                            dtype=jnp.float32)
    out3 = double_l1_loss(logits0c, logits1c, yc,
                          reg_weight=reg_w, cls_weight=cls_w,
                          smooth_l1=True, block_rows=64)
    out3 = jax.tree_util.tree_map(jax.block_until_ready, out3)
    _check(out3, _reference(logits0c, logits1c, yc, reg_w, cls_w,
                            smooth_l1=True))

    print("KERNEL_OK")
</pallas_src>

<mosaic_0001>
module attributes {stable_mosaic.version = 11 : i64} {
  func.func @kernel(%arg0: i32, %arg1: memref<16x240xf32, #tpu.memory_space<vmem>>, %arg2: memref<16x1xf32, #tpu.memory_space<vmem>>, %arg3: memref<16x1xf32, #tpu.memory_space<vmem>>, %arg4: memref<8x128xf32, #tpu.memory_space<vmem>>) attributes {dimension_semantics = [#tpu.dimension_semantics<parallel>], iteration_bounds = array<i64: 1>, scalar_prefetch = 0 : i64, scratch_operands = 0 : i64, tpu.core_type = #tpu.core_type<tc>, window_params = [{transform_indices = @transform_0, window_bounds = array<i64: 16, 240>}, {transform_indices = @transform_1, window_bounds = array<i64: 16, 1>}, {transform_indices = @transform_2, window_bounds = array<i64: 16, 1>}, {transform_indices = @transform_3, window_bounds = array<i64: 8, 128>}]} {
    %0 = tpu.iota {dimensions = array<i32: 0>} : vector<16x1xi32>
    %c16_i32 = arith.constant 16 : i32
    %1 = arith.muli %arg0, %c16_i32 : i32
    %2 = vector.broadcast %1 : i32 to vector<16x1xi32>
    %3 = arith.addi %2, %0 : vector<16x1xi32>
    %c16_i32_0 = arith.constant 16 : i32
    %4 = vector.broadcast %c16_i32_0 : i32 to vector<16x1xi32>
    %5 = arith.cmpi slt, %3, %4 : vector<16x1xi32>
    %c0 = arith.constant 0 : index
    %c0_1 = arith.constant 0 : index
    %6 = vector.load %arg1[%c0, %c0_1] : memref<16x240xf32, #tpu.memory_space<vmem>>, vector<16x240xf32>
    %cst = arith.constant 0.000000e+00 : f32
    %7 = vector.shape_cast %5 : vector<16x1xi1> to vector<16x1xi1>
    %8 = vector.broadcast %7 : vector<16x1xi1> to vector<16x240xi1>
    %9 = vector.broadcast %cst : f32 to vector<16x240xf32>
    %10 = arith.select %8, %6, %9 : vector<16x240xi1>, vector<16x240xf32>
    %cst_2 = arith.constant dense<0xFF800000> : vector<16xf32>
    %11 = vector.multi_reduction <maximumf>, %10, %cst_2 [1] : vector<16x240xf32> to vector<16xf32>
    %12 = vector.shape_cast %11 : vector<16xf32> to vector<16x1xf32>
    %13 = vector.broadcast %12 : vector<16x1xf32> to vector<16x240xf32>
    %14 = arith.subf %10, %13 : vector<16x240xf32>
    %15 = math.exp %14 : vector<16x240xf32>
    %cst_3 = arith.constant dense<0.000000e+00> : vector<16xf32>
    %16 = vector.multi_reduction <add>, %15, %cst_3 [1] : vector<16x240xf32> to vector<16xf32>
    %17 = vector.shape_cast %16 : vector<16xf32> to vector<16x1xf32>
    %18 = tpu.iota {dimensions = array<i32: 1>} : vector<1x240xi32>
    %19 = arith.sitofp %18 : vector<1x240xi32> to vector<1x240xf32>
    %20 = vector.broadcast %19 : vector<1x240xf32> to vector<16x240xf32>
    %21 = arith.mulf %15, %20 : vector<16x240xf32>
    %cst_4 = arith.constant dense<0.000000e+00> : vector<16xf32>
    %22 = vector.multi_reduction <add>, %21, %cst_4 [1] : vector<16x240xf32> to vector<16xf32>
    %23 = vector.shape_cast %22 : vector<16xf32> to vector<16x1xf32>
    %24 = arith.divf %23, %17 : vector<16x1xf32>
    %c0_5 = arith.constant 0 : index
    %c0_6 = arith.constant 0 : index
    %25 = vector.load %arg2[%c0_5, %c0_6] : memref<16x1xf32, #tpu.memory_space<vmem>>, vector<16x1xf32>
    %c0_7 = arith.constant 0 : index
    %c0_8 = arith.constant 0 : index
    %26 = vector.load %arg3[%c0_7, %c0_8] : memref<16x1xf32, #tpu.memory_space<vmem>>, vector<16x1xf32>
    %27 = arith.subf %25, %26 : vector<16x1xf32>
    %28 = math.absf %27 : vector<16x1xf32>
    %cst_9 = arith.constant 0.000000e+00 : f32
    %29 = vector.broadcast %cst_9 : f32 to vector<16x1xf32>
    %30 = arith.select %5, %28, %29 : vector<16x1xi1>, vector<16x1xf32>
    %31 = arith.subf %24, %26 : vector<16x1xf32>
    %32 = math.absf %31 : vector<16x1xf32>
    %cst_10 = arith.constant 0.000000e+00 : f32
    %33 = vector.broadcast %cst_10 : f32 to vector<16x1xf32>
    %34 = arith.select %5, %32, %33 : vector<16x1xi1>, vector<16x1xf32>
    %35 = vector.shape_cast %30 : vector<16x1xf32> to vector<1x16x1xf32>
    %cst_11 = arith.constant dense<0.000000e+00> : vector<1xf32>
    %36 = vector.multi_reduction <add>, %35, %cst_11 [1, 2] : vector<1x16x1xf32> to vector<1xf32>
    %37 = vector.shape_cast %36 : vector<1xf32> to vector<1x1x1xf32>
    %38 = vector.extract %37[0, 0, 0] : f32 from vector<1x1x1xf32>
    %39 = vector.broadcast %38 : f32 to vector<1x1xf32>
    %40 = vector.shape_cast %34 : vector<16x1xf32> to vector<1x16x1xf32>
    %cst_12 = arith.constant dense<0.000000e+00> : vector<1xf32>
    %41 = vector.multi_reduction <add>, %40, %cst_12 [1, 2] : vector<1x16x1xf32> to vector<1xf32>
    %42 = vector.shape_cast %41 : vector<1xf32> to vector<1x1x1xf32>
    %43 = vector.extract %42[0, 0, 0] : f32 from vector<1x1x1xf32>
    %44 = vector.broadcast %43 : f32 to vector<1x1xf32>
    %45 = tpu.iota {dimensions = array<i32: 1>} : vector<8x128xi32>
    %c0_i32 = arith.constant 0 : i32
    %46 = vector.broadcast %c0_i32 : i32 to vector<8x128xi32>
    %47 = arith.cmpi eq, %45, %46 : vector<8x128xi32>
    %cst_13 = arith.constant 0.000000e+00 : f32
    %48 = vector.shape_cast %39 : vector<1x1xf32> to vector<1x1xf32>
    %49 = vector.broadcast %48 : vector<1x1xf32> to vector<8x128xf32>
    %50 = vector.broadcast %cst_13 : f32 to vector<8x128xf32>
    %51 = arith.select %47, %49, %50 : vector<8x128xi1>, vector<8x128xf32>
    %c1_i32 = arith.constant 1 : i32
    %52 = vector.broadcast %c1_i32 : i32 to vector<8x128xi32>
    %53 = arith.cmpi eq, %45, %52 : vector<8x128xi32>
    %cst_14 = arith.constant 0.000000e+00 : f32
    %54 = vector.shape_cast %44 : vector<1x1xf32> to vector<1x1xf32>
    %55 = vector.broadcast %54 : vector<1x1xf32> to vector<8x128xf32>
    %56 = vector.broadcast %cst_14 : f32 to vector<8x128xf32>
    %57 = arith.select %53, %55, %56 : vector<8x128xi1>, vector<8x128xf32>
    %58 = arith.addf %51, %57 : vector<8x128xf32>
    %c0_15 = arith.constant 0 : index
    %c0_16 = arith.constant 0 : index
    %59 = vector.load %arg4[%c0_15, %c0_16] : memref<8x128xf32, #tpu.memory_space<vmem>>, vector<8x128xf32>
    tpu.vector_store %arg4[%c0_15, %c0_16], %58 {strides = array<i32>} : memref<8x128xf32, #tpu.memory_space<vmem>>, vector<8x128xf32>,
    return
  }
  func.func @transform_0(%arg0: i32) -> (i32, i32) {
    %c0_i32 = arith.constant 0 : i32
    %c0_i32_0 = arith.constant 0 : i32
    return %arg0, %c0_i32 : i32, i32
  }
  func.func @transform_1(%arg0: i32) -> (i32, i32) {
    %c0_i32 = arith.constant 0 : i32
    %c0_i32_0 = arith.constant 0 : i32
    return %arg0, %c0_i32 : i32, i32
  }
  func.func @transform_2(%arg0: i32) -> (i32, i32) {
    %c0_i32 = arith.constant 0 : i32
    %c0_i32_0 = arith.constant 0 : i32
    return %arg0, %c0_i32 : i32, i32
  }
  func.func @transform_3(%arg0: i32) -> (i32, i32) {
    %c0_i32 = arith.constant 0 : i32
    %c0_i32_0 = arith.constant 0 : i32
    return %arg0, %c0_i32 : i32, i32
  }
}

</mosaic_0001>

<bundles_post_ra>
// kernel: tpu_custom_call.1
= control target key start
LH: loop header
LB: loop body
LE: loop exit
PB: predicated region body
PF: predicated region fallthrough
CT: control target
= control target key end

     0   :  { %8 = vsyncpa [#allocation3], 0  ;;  %s408_s0 = inlined_call_operand.hbm [shape: f32[16,240], index: 0, kind: input, shape index: {}]   ;;  %s409_s1 = inlined_call_operand.hbm [shape: f32[16,1], index: 1, kind: input, shape index: {}]   ;;  %s410_s2 = inlined_call_operand.hbm [shape: f32[16,1], index: 2, kind: input, shape index: {}]   ;;  %s411_s3 = inlined_call_operand.hbm [shape: f32[8,128], index: 3, kind: output, shape index: {}]  }
   0x1   :  { %9 = vsyncpa [#allocation6], 0 }
   0x2   :  { %10 = vsyncpa [#allocation4], 0  ;;  %s310_s12 = smov [#allocation5]   ;;  %s216_s16 = scalar_lea.hbm %s409_s1, 256 }
   0x3   :  { %s28_s13 = sshll.u32 %s310_s12, 4  ;;  %p217_p0 = scmp.ne.s32.totalorder %s409_s1, %s216_s16  ;;  %s29_s13 = int_to_ptr.vmem [resolvable:$true] %s28_s13 }
   0x4   :  { %p220_p1 = scmp.lt.u32.totalorder %s216_s16, %s409_s1 }
   0x6   :  { %p222_p2 = pnand %p220_p1, %p217_p0 }
   0x8   :  { %225 = shalt.err (!%p222_p2)
}
   0x9   :  { %s226_s21 = scalar_lea.vmem %s29_s13, 256  ;;  %p231_p4 = scmp.lt.s32.totalorder %s29_s13, %s29_s13 }
   0xa   :  { %p227_p3 = scmp.ne.s32.totalorder %s29_s13, %s226_s21  ;;  %p232_p5 = scmp.lt.s32.totalorder %s226_s21, %s226_s21 }
   0xc   :  { %p233_p6 = por %p232_p5, %p231_p4 }
   0xe   :  { %p234_p7 = pnand %p233_p6, %p227_p3 }
  0x10   :  { %237 = shalt.err (!%p234_p7)
}
  0x11   :  { %s311_s22 = smov 128   ;;  %s312_s23 = smov 8  }
  0x12   :  { %34 = dma.hbm_to_vmem [thread:$0]  %s409_s1, 256, %s29_s13, [#allocation6], %s311_s22, %s311_s22, %s312_s23  }
  0x13   :  { %s313_s26 = smov [#allocation2]   ;;  %s238_s30 = scalar_lea.hbm %s408_s0, 512 }
  0x14   :  { %s16_s27 = sshll.u32 %s313_s26, 4  ;;  %p239_p8 = scmp.ne.s32.totalorder %s408_s0, %s238_s30  ;;  %s17_s27 = int_to_ptr.vmem [resolvable:$true] %s16_s27 }
  0x15   :  { %p242_p9 = scmp.lt.u32.totalorder %s238_s30, %s408_s0 }
  0x17   :  { %p244_p10 = pnand %p242_p9, %p239_p8 }
  0x19   :  { %247 = shalt.err (!%p244_p10)
}
  0x1a   :  { %s248_s8 = scalar_lea.vmem %s17_s27, 512  ;;  %p253_p12 = scmp.lt.s32.totalorder %s17_s27, %s17_s27 }
  0x1b   :  { %p249_p11 = scmp.ne.s32.totalorder %s17_s27, %s248_s8  ;;  %p254_p13 = scmp.lt.s32.totalorder %s248_s8, %s248_s8 }
  0x1d   :  { %p255_p0 = por %p254_p13, %p253_p12 }
  0x1f   :  { %p256_p1 = pnand %p255_p0, %p249_p11 }
  0x21   :  { %259 = shalt.err (!%p256_p1)
}
  0x22   :  { %s314_s1 = smov 256   ;;  %s315_s9 = smov 16  }
  0x23   :  { %22 = dma.hbm_to_vmem [thread:$0]  %s408_s0, 512, %s17_s27, [#allocation3], %s314_s1, %s314_s1, %s315_s9  }
  0x24   :  { %s316_s12 = smov [#allocation7]   ;;  %s260_s16 = scalar_lea.hbm %s410_s2, 256 }
  0x25   :  { %s40_s13 = sshll.u32 %s316_s12, 4  ;;  %p261_p2 = scmp.ne.s32.totalorder %s410_s2, %s260_s16  ;;  %s41_s13 = int_to_ptr.vmem [resolvable:$true] %s40_s13 }
  0x26   :  { %p264_p3 = scmp.lt.u32.totalorder %s260_s16, %s410_s2 }
  0x28   :  { %p266_p4 = pnand %p264_p3, %p261_p2 }
  0x2a   :  { %269 = shalt.err (!%p266_p4)
}
  0x2b   :  { %s270_s21 = scalar_lea.vmem %s41_s13, 256  ;;  %p275_p6 = scmp.lt.s32.totalorder %s41_s13, %s41_s13 }
  0x2c   :  { %p271_p5 = scmp.ne.s32.totalorder %s41_s13, %s270_s21  ;;  %p276_p7 = scmp.lt.s32.totalorder %s270_s21, %s270_s21 }
  0x2e   :  { %p277_p8 = por %p276_p7, %p275_p6 }
  0x30   :  { %p278_p9 = pnand %p277_p8, %p271_p5 }
  0x32   :  { %281 = shalt.err (!%p278_p9)
}
  0x33   :  { %46 = dma.hbm_to_vmem [thread:$0]  %s410_s2, 256, %s41_s13, [#allocation6], %s311_s22, %s311_s22, %s312_s23  }
  0x34   :  { %304 = dma.done.wait [#allocation3], 512  }
  0x35   :  { %305 = vsyncadd [#allocation3], 4294966784 }
  0x36   :  { %306 = dma.done.wait [#allocation6], 512  }
  0x37   :  { %307 = vsyncadd [#allocation6], 4294966784  ;;  %vm77_vm0 = vcmask 916480   ;;  %v65_v0 = vld [vmem:[#allocation2] sm:$0xff]  ;;  %v66_v1 = vld [vmem:[#allocation2 + $0x8] sm:$0xff]  ;;  %v106_v11 = vlaneseq  ;;  %vm143_vm1 = vcmask 7168  }
  0x38   :  { %v78_v2 = vsel %vm77_vm0, %v66_v1, -inf  ;;  %v67_v3 = vld [vmem:[#allocation2 + $0x10] sm:$0xff]  ;;  %v68_v4 = vld [vmem:[#allocation2 + $0x18] sm:$0xff]  ;;  %v127_v39 = vld [vmem:[#allocation5] sm:$0xff]  ;;  %s317_s23 = smov [#allocation8]  }
  0x39   :  { %v79_v5 = vmax.f32 %v65_v0, %v78_v2  ;;  %v82_v6 = vsel %vm77_vm0, %v68_v4, -inf  ;;  %v382_v17 = vand.u32 127, %v106_v11  ;;  %v129_v40 = vld [vmem:[#allocation7] sm:$0xff]  ;;  %v128_v42 = vld [vmem:[#allocation5 + $0x8] sm:$0xff]  ;;  %v130_v43 = vld [vmem:[#allocation7 + $0x8] sm:$0xff]  ;;  %s182_s25 = sshll.u32 %s317_s23, 4  ;;  %s183_s25 = int_to_ptr.vmem [resolvable:$true] %s182_s25 }
  0x3a   :  { %v83_v7 = vmax.f32 %v67_v3, %v82_v6  ;;  %v131_v41 = vsub.f32 %v127_v39, %v129_v40  ;;  %v132_v44 = vsub.f32 %v128_v42, %v130_v43  ;;  %s282_s26 = scalar_lea.vmem %s183_s25, 128  ;;  %p287_p11 = scmp.lt.s32.totalorder %s183_s25, %s183_s25 }
  0x3b   :  { %80 = vmax.xlane.f32.xlu0 %v79_v5  ;;  %v108_v20 = vadd.s32 128, %v382_v17  ;;  %v109_v21 = vcvt.s32.f32 %v382_v17  ;;  %vm168_vm2 = vcmp.eq.s32.totalorder %v382_v17, 0  ;;  %vm171_vm3 = vcmp.eq.s32.totalorder %v382_v17, 1  ;;  %p283_p10 = scmp.ne.s32.totalorder %s183_s25, %s282_s26  ;;  %p288_p12 = scmp.lt.s32.totalorder %s282_s26, %s282_s26 }
  0x3c   :  { %v133_v45 = vand.u32 2147483647, %v131_v41  ;;  %v134_v46 = vand.u32 2147483647, %v132_v44 }
  0x3d   :  { %v110_v22 = vcvt.s32.f32 %v108_v20  ;;  %p289_p13 = por %p288_p12, %p287_p11 }
  0x3e   :  { %v144_v47 = vsel %vm143_vm1, %v133_v45, 0.0  ;;  %v145_v48 = vsel %vm143_vm1, %v134_v46, 0.0 }
  0x3f   :  { %84 = vmax.xlane.f32.xlu0 %v83_v7  ;;  %v146_v49 = vadd.f32 %v145_v48, %v144_v47  ;;  %p290_p0 = pnand %p289_p13, %p283_p10 }
  0xc8   :  { %v81_v8 = vpop.xlane.xlu0 %80 }
  0xc9   :  { %v86_v9 = vsub.f32 %v65_v0, %v81_v8  ;;  %v87_v10 = vsub.f32 %v66_v1, %v81_v8 }
  0xcb   :  { %v90_v12 = vmul.f32 1.442695, %v86_v9  ;;  %v92_v13 = vmul.f32 1.442695, %v87_v10 }
  0xcc   :  { %v85_v14 = vpop.xlane.xlu0 %84 }
  0xcd   :  { %204 = vpow2.f32 %v90_v12  ;;  %v88_v15 = vsub.f32 %v67_v3, %v85_v14  ;;  %v89_v16 = vsub.f32 %v68_v4, %v85_v14 }
  0xce   :  { %206 = vpow2.f32 %v92_v13 }
  0xcf   :  { %v94_v18 = vmul.f32 1.442695, %v88_v15  ;;  %v96_v19 = vmul.f32 1.442695, %v89_v16 }
  0xd1   :  { %208 = vpow2.f32 %v94_v18 }
  0xd2   :  { %210 = vpow2.f32 %v96_v19 }
  0xd7   :  { %v205_v23 = vpop.eup %204 }
  0xd8   :  { %v207_v24 = vpop.eup %206  ;;  %v111_v25 = vmul.f32 %v205_v23, %v109_v21 }
  0xd9   :  { %v98_v26 = vsel %vm77_vm0, %v207_v24, 0.0  ;;  %v112_v27 = vmul.f32 %v207_v24, %v110_v22 }
  0xda   :  { %v99_v28 = vadd.f32 %v205_v23, %v98_v26 }
  0xdb   :  { %v209_v29 = vpop.eup %208  ;;  %v115_v30 = vsel %vm77_vm0, %v112_v27, 0.0 }
  0xdc   :  { %v211_v31 = vpop.eup %210  ;;  %100 = vadd.xlane.f32.xlu1 %v99_v28  ;;  %v116_v32 = vadd.f32 %v115_v30, %v111_v25  ;;  %v113_v36 = vmul.f32 %v209_v29, %v109_v21 }
  0xdd   :  { %v102_v33 = vsel %vm77_vm0, %v211_v31, 0.0  ;;  %v114_v34 = vmul.f32 %v211_v31, %v110_v22 }
  0xde   :  { %117 = vadd.xlane.f32.xlu0 %v116_v32  ;;  %v103_v35 = vadd.f32 %v209_v29, %v102_v33 }
  0xdf   :  { %v119_v37 = vsel %vm77_vm0, %v114_v34, 0.0 }
  0xe0   :  { %104 = vadd.xlane.f32.xlu1 %v103_v35  ;;  %v120_v38 = vadd.f32 %v119_v37, %v113_v36 }
  0xe2   :  { %147 = vadd.xlane.f32.xlu0 %v146_v49 }
  0xe4   :  { %121 = vadd.xlane.f32.xlu1 %v120_v38 }
 0x169   :  { %v101_v50 = vpop.xlane.xlu1 %100 }
 0x16a   :  { %212 = vrcp.f32 %v101_v50 }
 0x16b   :  { %v118_v53 = vpop.xlane.xlu0 %117 }
 0x16d   :  { %v105_v51 = vpop.xlane.xlu1 %104 }
 0x16e   :  { %214 = vrcp.f32 %v105_v51 }
 0x16f   :  { %v148_v1 = vpop.xlane.xlu0 %147 }
 0x170   :  { %v149_v2 = vrot.slane %v148_v1, 4 }
 0x171   :  { %v122_v57 = vpop.xlane.xlu1 %121 }
 0x172   :  { %v150_v3 = vadd.f32 %v149_v2, %v148_v1 }
 0x174   :  { %v213_v52 = vpop.eup %212  ;;  %v151_v4 = vrot.slane %v150_v3, 2 }
 0x175   :  { %v124_v54 = vmul.f32 %v213_v52, %v118_v53 }
 0x176   :  { %v152_v5 = vadd.f32 %v151_v4, %v150_v3 }
 0x177   :  { %v137_v55 = vsub.f32 %v124_v54, %v129_v40 }
 0x178   :  { %v215_v56 = vpop.eup %214  ;;  %v153_v6 = vrot.slane %v152_v5, 1 }
 0x179   :  { %v126_v58 = vmul.f32 %v215_v56, %v122_v57  ;;  %v139_v59 = vand.u32 2147483647, %v137_v55 }
 0x17a   :  { %v154_v7 = vadd.f32 %v153_v6, %v152_v5 }
 0x17b   :  { %v138_v60 = vsub.f32 %v126_v58, %v130_v43  ;;  %v156_v62 = vsel %vm143_vm1, %v139_v59, 0.0 }
 0x17c   :  { %192 = vpush %v154_v7 }
 0x17d   :  { %v140_v61 = vand.u32 2147483647, %v138_v60 }
 0x17f   :  { %v157_v63 = vsel %vm143_vm1, %v140_v61, 0.0 }
 0x180   :  { %v158_v0 = vadd.f32 %v157_v63, %v156_v62 }
 0x182   :  { %159 = vadd.xlane.f32.xlu1 %v158_v0 }
 0x1ad   :  { %s193_s2 = spop %192 }
 0x1ae   :  { %v169_v15 = vstv %s193_s2 }
 0x1af   :  { %v170_v18 = vsel %vm168_vm2, %v169_v15, 0.0 }
 0x20f   :  { %v160_v8 = vpop.xlane.xlu1 %159 }
 0x210   :  { %v161_v9 = vrot.slane %v160_v8, 4 }
 0x212   :  { %v162_v10 = vadd.f32 %v161_v9, %v160_v8 }
 0x214   :  { %v163_v11 = vrot.slane %v162_v10, 2 }
 0x216   :  { %v164_v12 = vadd.f32 %v163_v11, %v162_v10 }
 0x218   :  { %v165_v13 = vrot.slane %v164_v12, 1 }
 0x21a   :  { %v166_v14 = vadd.f32 %v165_v13, %v164_v12 }
 0x21c   :  { %194 = vpush %v166_v14 }
 0x24d   :  { %s195_s22 = spop %194 }
 0x24e   :  { %v172_v16 = vstv %s195_s22 }
 0x24f   :  { %v173_v19 = vsel %vm171_vm3, %v172_v16, 0.0 }
 0x250   :  { %v174_v20 = vadd.f32 %v173_v19, %v170_v18 }
 0x252   :  { %175 = vst [vmem:[#allocation8] sm:$0xff] %v174_v20 }
 0x253   :  { %293 = shalt.err (!%p290_p0)
}
 0x254   :  { %s294_s29 = scalar_lea.hbm %s411_s3, 128 }
 0x255   :  { %p295_p1 = scmp.ne.s32.totalorder %s411_s3, %s294_s29  ;;  %p298_p2 = scmp.lt.u32.totalorder %s294_s29, %s411_s3 }
 0x257   :  { %p300_p3 = pnand %p298_p2, %p295_p1 }
 0x259   :  { %303 = shalt.err (!%p300_p3)
}
 0x25a   :  { %185 = dma.vmem_to_hbm [thread:$0]  %s183_s25, 128, %s411_s3, [#allocation4]  }
 0x25b   :  { %308 = dma.done.wait [#allocation4], 128  }
 0x25c   :  { %309 = vsyncadd [#allocation4], 4294967168 }
 0x25d   :  { %189 = vsyncpa [#allocation3], 1 }
 0x25e   :  { %190 = vsyncpa [#allocation6], 1 }
 0x25f   :  { %191 = vsyncpa [#allocation4], 1 }

</bundles_post_ra>
